<compile_context>
chip_gen: v5e
topology: v5e:2x2
jax: 0.10.0
libtpu: 0.0.40
codegen_flags: <defaults>
</compile_context>

<pallas_src>
import functools

import jax
import jax.numpy as jnp
from jax import lax
from jax.experimental import pallas as pl
from jax.experimental.pallas import tpu as pltpu


def _round_up(x, m):
    return ((x + m - 1) // m) * m


def _cdiv(a, b):
    return -(-a // b)


def _pick_tile_b(batch, width, target_bytes=4 << 20):
    """Rows per tile: ~4 MiB of f32 per input block at its VMEM-layout width."""
    wpad = _round_up(max(width, 1), 128)
    tb = target_bytes // (wpad * 4)
    tb = max(8, min(8192, (tb // 8) * 8))
    return batch if batch <= tb else tb


def _masked_partial_sums(pred, labels, tile_b, n_splits, vmem_limit_bytes):
    """Gridded masked reduction.

    Returns a (4,) f32 vector: (nll_sum, correct_sum, valid_cnt, pos_cnt).
    """
    batch, width = pred.shape
    num_tiles = _cdiv(batch, tile_b)
    n_splits = max(1, min(n_splits, num_tiles))
    tiles_per_split = _cdiv(num_tiles, n_splits)
    # Row masking is only emitted if the (split x tile) cover overshoots B
    # (ragged last tile and/or clamped duplicate tiles from over-splitting).
    need_row_mask = tiles_per_split * n_splits * tile_b != batch

    def kernel(pred_ref, real_ref, out_ref):
        i = pl.program_id(1)

        @pl.when(i == 0)
        def _init():
            out_ref[...] = jnp.zeros_like(out_ref)

        pred_t = pred_ref[...]      # (tile_b, width) f32, prob of class 1
        lab_t = real_ref[...]       # (tile_b, width) f32, {0, 1}, -1 = ignore

        valid = lab_t != -1.0
        if need_row_mask:
            t = pl.program_id(0) * tiles_per_split + i
            row = lax.broadcasted_iota(jnp.int32, pred_t.shape, 0) + t * tile_b
            valid = valid & (row < batch)
        valid_f = valid.astype(jnp.float32)

        is_one = lab_t == 1.0
        # NLLLoss(ignore_index=-1) over log([1-p, p]): select ONE class prob,
        # one EUP log.  Select-before-log keeps garbage rows / ignored labels
        # out of the log (no 0 * inf = NaN hazard).
        p_sel = jnp.where(is_one, pred_t, 1.0 - pred_t)
        p_sel = jnp.where(valid, p_sel, 1.0)
        nll = -jnp.log(p_sel)

        # argmax([1-p, p]) == label  <=>  (p > 0.5) == (label == 1)
        correct = jnp.where((pred_t > 0.5) == is_one, valid_f, 0.0)
        pos = jnp.where(is_one, valid_f, 0.0)

        # Per-tile sublane (row) reduction, then a tiny (1, width) RMW per
        # channel -- no full-width accumulator traffic per input vreg.
        out_ref[0, 0:1, :] += jnp.sum(nll, axis=0, keepdims=True)
        out_ref[0, 1:2, :] += jnp.sum(correct, axis=0, keepdims=True)
        out_ref[0, 2:3, :] += jnp.sum(valid_f, axis=0, keepdims=True)
        out_ref[0, 3:4, :] += jnp.sum(pos, axis=0, keepdims=True)

    def in_map(c, i):
        t = jnp.minimum(c * tiles_per_split + i, num_tiles - 1)
        return (t, 0)

    out = pl.pallas_call(
        kernel,
        out_shape=jax.ShapeDtypeStruct((n_splits, 4, width), jnp.float32),
        grid=(n_splits, tiles_per_split),
        in_specs=[
            pl.BlockSpec((tile_b, width), in_map),
            pl.BlockSpec((tile_b, width), in_map),
        ],
        out_specs=pl.BlockSpec((1, 4, width), lambda c, i: (c, 0, 0)),
        compiler_params=pltpu.CompilerParams(
            dimension_semantics=("parallel", "arbitrary"),
            vmem_limit_bytes=vmem_limit_bytes,
        ),
    )(pred, labels)

    # Tiny epilogue reduce: (n_splits, 4, width) -> (4,)
    return jnp.sum(out, axis=(0, 2))


def _auc_mann_whitney(flat_p, flat_y, n_pos, n_neg):
    """sklearn.roc_auc_score equivalent: tie-averaged ranks, O(N log N).

    n_pos / n_neg come from the Pallas pass (no extra full-array reductions).
    """
    valid = flat_y != -1.0
    pos = valid & (flat_y == 1.0)

    n = flat_p.shape[0]
    # Push invalid entries past every valid probability so valid items get
    # ranks 1..n_valid.
    p_key = jnp.where(valid, flat_p, jnp.inf)
    order = jnp.argsort(p_key)
    p_sorted = p_key[order]
    pos_sorted = pos[order]

    idx = jnp.arange(n, dtype=jnp.int32)
    neq_prev = jnp.concatenate(
        [jnp.ones((1,), jnp.bool_), p_sorted[1:] != p_sorted[:-1]]
    )
    neq_next = jnp.concatenate(
        [p_sorted[1:] != p_sorted[:-1], jnp.ones((1,), jnp.bool_)]
    )
    grp_start = lax.cummax(jnp.where(neq_prev, idx, -1))
    grp_end = lax.cummin(jnp.where(neq_next, idx, n), reverse=True)
    avg_rank = (grp_start + grp_end).astype(jnp.float32) * 0.5 + 1.0

    rank_sum = jnp.sum(jnp.where(pos_sorted, avg_rank, 0.0))
    both = (n_pos > 0.0) & (n_neg > 0.0)
    denom = jnp.maximum(n_pos * n_neg, 1.0)
    auc = (rank_sum - n_pos * (n_pos + 1.0) * 0.5) / denom
    return jnp.where(both, auc, -1.0), both


@functools.partial(jax.jit, static_argnames=("n_splits",))
def kt_loss(pred_answers, real_answers, *, n_splits=1):
    """Pallas-backed equivalent of KTLoss.forward.

    pred_answers: [B, seq_len-1] f32 probabilities of a correct answer
    real_answers: [B, seq_len]   labels in {0, 1}, -1 = ignore
    returns (loss, auc, acc)
    """
    pred = pred_answers.astype(jnp.float32)
    labels = real_answers.astype(jnp.float32)[:, 1:]   # real_answers[:, 1:]
    batch, width = pred.shape

    tile_b = _pick_tile_b(batch, width)
    sums = _masked_partial_sums(
        pred, labels, tile_b, n_splits, vmem_limit_bytes=48 * 1024 * 1024
    )
    nll_sum, correct_sum, valid_cnt, pos_cnt = sums[0], sums[1], sums[2], sums[3]
    neg_cnt = valid_cnt - pos_cnt

    safe_cnt = jnp.maximum(valid_cnt, 1.0)
    loss = jnp.where(valid_cnt > 0.0, nll_sum / safe_cnt, 0.0)
    acc = jnp.where(valid_cnt > 0.0, correct_sum / safe_cnt, 0.0)

    # AUC (sort/rank Mann-Whitney, == sklearn.roc_auc_score).
    auc, both = _auc_mann_whitney(pred.reshape(-1), labels.reshape(-1),
                                  pos_cnt, neg_cnt)
    # Original: roc_auc_score raising (single class present) => auc = acc = -1
    acc = jnp.where(both, acc, -1.0)
    return loss, auc, acc


def _kt_loss_ref(pred_answers, real_answers):
    """Pure-JAX reference (pairwise AUC is fine at tiny sizes)."""
    real = real_answers[:, 1:]
    mask = real != -1.0
    is_one = real == 1.0
    p_sel = jnp.where(mask, jnp.where(is_one, pred_answers, 1.0 - pred_answers), 1.0)
    nll = -jnp.log(p_sel)
    cnt = jnp.sum(mask.astype(jnp.float32))
    loss = jnp.sum(nll) / cnt
    correct = jnp.where(mask & ((pred_answers > 0.5) == is_one), 1.0, 0.0)
    acc = jnp.sum(correct) / cnt

    flat_p = pred_answers.reshape(-1)
    flat_y = real.reshape(-1)
    valid = flat_y != -1.0
    pos = valid & (flat_y == 1.0)
    neg = valid & (flat_y == 0.0)
    n_pos = jnp.sum(pos.astype(jnp.float32))
    n_neg = jnp.sum(neg.astype(jnp.float32))
    diff = flat_p[:, None] - flat_p[None, :]
    score = (diff > 0).astype(jnp.float32) + 0.5 * (diff == 0).astype(jnp.float32)
    pmask = pos[:, None] & neg[None, :]
    auc = jnp.sum(jnp.where(pmask, score, 0.0)) / jnp.maximum(n_pos * n_neg, 1.0)
    both = (n_pos > 0) & (n_neg > 0)
    return loss, jnp.where(both, auc, -1.0), jnp.where(both, acc, -1.0)


if __name__ == "__main__":
    B, L = 2, 8  # batch_size=2, seq_len=8 -> pred is [2, 7]
    key = jax.random.PRNGKey(0)
    k1, k2, k3 = jax.random.split(key, 3)

    pred_answers = jax.random.uniform(
        k1, (B, L - 1), minval=0.05, maxval=0.95, dtype=jnp.float32
    )
    real_answers = jax.random.bernoulli(k2, 0.5, (B, L)).astype(jnp.float32)
    drop = jax.random.bernoulli(k3, 0.2, (B, L))
    real_answers = jnp.where(drop, -1.0, real_answers)  # -1 = ignore

    loss, auc, acc = kt_loss(pred_answers, real_answers)
    jax.block_until_ready((loss, auc, acc))

    ref_loss, ref_auc, ref_acc = _kt_loss_ref(pred_answers, real_answers)
    assert jnp.allclose(loss, ref_loss, atol=1e-5), (loss, ref_loss)
    assert jnp.allclose(auc, ref_auc, atol=1e-5), (auc, ref_auc)
    assert jnp.allclose(acc, ref_acc, atol=1e-6), (acc, ref_acc)

    print("KERNEL_OK")
</pallas_src>

<mosaic_0001>
module attributes {stable_mosaic.version = 11 : i64} {
  func.func @kernel(%arg0: i32, %arg1: i32, %arg2: memref<2x7xf32, #tpu.memory_space<vmem>>, %arg3: memref<2x7xf32, #tpu.memory_space<vmem>>, %arg4: memref<1x4x7xf32, #tpu.memory_space<vmem>>) attributes {dimension_semantics = [#tpu.dimension_semantics<parallel>, #tpu.dimension_semantics<arbitrary>], iteration_bounds = array<i64: 1, 1>, scalar_prefetch = 0 : i64, scratch_operands = 0 : i64, tpu.core_type = #tpu.core_type<tc>, window_params = [{transform_indices = @transform_0, window_bounds = array<i64: 2, 7>}, {transform_indices = @transform_1, window_bounds = array<i64: 2, 7>}, {transform_indices = @transform_2, window_bounds = array<i64: 1, 4, 7>}]} {
    %c0_i32 = arith.constant 0 : i32
    %0 = arith.cmpi eq, %arg1, %c0_i32 : i32
    %1 = arith.extui %0 : i1 to i32
    %c0_i32_0 = arith.constant 0 : i32
    %2 = arith.cmpi ne, %1, %c0_i32_0 : i32
    scf.if %2 {
      %cst_37 = arith.constant 0.000000e+00 : f32
      %59 = vector.broadcast %cst_37 : f32 to vector<1x4x7xf32>
      %c0_38 = arith.constant 0 : index
      %c0_39 = arith.constant 0 : index
      %c0_40 = arith.constant 0 : index
      %60 = vector.load %arg4[%c0_38, %c0_39, %c0_40] : memref<1x4x7xf32, #tpu.memory_space<vmem>>, vector<1x4x7xf32>
      tpu.vector_store %arg4[%c0_38, %c0_39, %c0_40], %59 {strides = array<i32>} : memref<1x4x7xf32, #tpu.memory_space<vmem>>, vector<1x4x7xf32>,
    } else {
    }
    %c0 = arith.constant 0 : index
    %c0_1 = arith.constant 0 : index
    %3 = vector.load %arg2[%c0, %c0_1] : memref<2x7xf32, #tpu.memory_space<vmem>>, vector<2x7xf32>
    %c0_2 = arith.constant 0 : index
    %c0_3 = arith.constant 0 : index
    %4 = vector.load %arg3[%c0_2, %c0_3] : memref<2x7xf32, #tpu.memory_space<vmem>>, vector<2x7xf32>
    %cst = arith.constant -1.000000e+00 : f32
    %5 = vector.broadcast %cst : f32 to vector<2x7xf32>
    %6 = arith.cmpf one, %4, %5 : vector<2x7xf32>
    %7 = arith.extui %6 : vector<2x7xi1> to vector<2x7xi32>
    %8 = arith.sitofp %7 : vector<2x7xi32> to vector<2x7xf32>
    %cst_4 = arith.constant 1.000000e+00 : f32
    %9 = vector.broadcast %cst_4 : f32 to vector<2x7xf32>
    %10 = arith.cmpf oeq, %4, %9 : vector<2x7xf32>
    %cst_5 = arith.constant 1.000000e+00 : f32
    %11 = vector.broadcast %cst_5 : f32 to vector<2x7xf32>
    %12 = arith.subf %11, %3 : vector<2x7xf32>
    %13 = arith.select %10, %3, %12 : vector<2x7xi1>, vector<2x7xf32>
    %cst_6 = arith.constant 1.000000e+00 : f32
    %14 = vector.broadcast %cst_6 : f32 to vector<2x7xf32>
    %15 = arith.select %6, %13, %14 : vector<2x7xi1>, vector<2x7xf32>
    %16 = math.log %15 : vector<2x7xf32>
    %cst_7 = arith.constant 0.000000e+00 : f32
    %17 = vector.broadcast %cst_7 : f32 to vector<2x7xf32>
    %18 = arith.subf %17, %16 : vector<2x7xf32>
    %cst_8 = arith.constant 5.000000e-01 : f32
    %19 = vector.broadcast %cst_8 : f32 to vector<2x7xf32>
    %20 = arith.cmpf ogt, %3, %19 : vector<2x7xf32>
    %21 = arith.xori %20, %10 : vector<2x7xi1>
    %cst_9 = arith.constant dense<true> : vector<2x7xi1>
    %22 = arith.xori %21, %cst_9 : vector<2x7xi1>
    %cst_10 = arith.constant 0.000000e+00 : f32
    %23 = vector.broadcast %cst_10 : f32 to vector<2x7xf32>
    %24 = arith.select %22, %8, %23 : vector<2x7xi1>, vector<2x7xf32>
    %cst_11 = arith.constant 0.000000e+00 : f32
    %25 = vector.broadcast %cst_11 : f32 to vector<2x7xf32>
    %26 = arith.select %10, %8, %25 : vector<2x7xi1>, vector<2x7xf32>
    %c0_12 = arith.constant 0 : index
    %c0_13 = arith.constant 0 : index
    %c0_14 = arith.constant 0 : index
    %27 = vector.load %arg4[%c0_12, %c0_13, %c0_14] : memref<1x4x7xf32, #tpu.memory_space<vmem>>, vector<1x1x7xf32>
    %28 = vector.shape_cast %27 : vector<1x1x7xf32> to vector<1x7xf32>
    %cst_15 = arith.constant dense<0.000000e+00> : vector<7xf32>
    %29 = vector.multi_reduction <add>, %18, %cst_15 [0] : vector<2x7xf32> to vector<7xf32>
    %30 = vector.shape_cast %29 : vector<7xf32> to vector<1x7xf32>
    %31 = arith.addf %28, %30 : vector<1x7xf32>
    %c0_16 = arith.constant 0 : index
    %c0_17 = arith.constant 0 : index
    %c0_18 = arith.constant 0 : index
    %32 = vector.load %arg4[%c0_16, %c0_17, %c0_18] : memref<1x4x7xf32, #tpu.memory_space<vmem>>, vector<1x1x7xf32>
    %33 = vector.shape_cast %32 : vector<1x1x7xf32> to vector<1x7xf32>
    %34 = vector.shape_cast %31 : vector<1x7xf32> to vector<1x1x7xf32>
    tpu.vector_store %arg4[%c0_16, %c0_17, %c0_18], %34 {strides = array<i32>} : memref<1x4x7xf32, #tpu.memory_space<vmem>>, vector<1x1x7xf32>,
    %c0_19 = arith.constant 0 : index
    %c1 = arith.constant 1 : index
    %c0_20 = arith.constant 0 : index
    %35 = vector.load %arg4[%c0_19, %c1, %c0_20] : memref<1x4x7xf32, #tpu.memory_space<vmem>>, vector<1x1x7xf32>
    %36 = vector.shape_cast %35 : vector<1x1x7xf32> to vector<1x7xf32>
    %cst_21 = arith.constant dense<0.000000e+00> : vector<7xf32>
    %37 = vector.multi_reduction <add>, %24, %cst_21 [0] : vector<2x7xf32> to vector<7xf32>
    %38 = vector.shape_cast %37 : vector<7xf32> to vector<1x7xf32>
    %39 = arith.addf %36, %38 : vector<1x7xf32>
    %c0_22 = arith.constant 0 : index
    %c1_23 = arith.constant 1 : index
    %c0_24 = arith.constant 0 : index
    %40 = vector.load %arg4[%c0_22, %c1_23, %c0_24] : memref<1x4x7xf32, #tpu.memory_space<vmem>>, vector<1x1x7xf32>
    %41 = vector.shape_cast %40 : vector<1x1x7xf32> to vector<1x7xf32>
    %42 = vector.shape_cast %39 : vector<1x7xf32> to vector<1x1x7xf32>
    tpu.vector_store %arg4[%c0_22, %c1_23, %c0_24], %42 {strides = array<i32>} : memref<1x4x7xf32, #tpu.memory_space<vmem>>, vector<1x1x7xf32>,
    %c0_25 = arith.constant 0 : index
    %c2 = arith.constant 2 : index
    %c0_26 = arith.constant 0 : index
    %43 = vector.load %arg4[%c0_25, %c2, %c0_26] : memref<1x4x7xf32, #tpu.memory_space<vmem>>, vector<1x1x7xf32>
    %44 = vector.shape_cast %43 : vector<1x1x7xf32> to vector<1x7xf32>
    %cst_27 = arith.constant dense<0.000000e+00> : vector<7xf32>
    %45 = vector.multi_reduction <add>, %8, %cst_27 [0] : vector<2x7xf32> to vector<7xf32>
    %46 = vector.shape_cast %45 : vector<7xf32> to vector<1x7xf32>
    %47 = arith.addf %44, %46 : vector<1x7xf32>
    %c0_28 = arith.constant 0 : index
    %c2_29 = arith.constant 2 : index
    %c0_30 = arith.constant 0 : index
    %48 = vector.load %arg4[%c0_28, %c2_29, %c0_30] : memref<1x4x7xf32, #tpu.memory_space<vmem>>, vector<1x1x7xf32>
    %49 = vector.shape_cast %48 : vector<1x1x7xf32> to vector<1x7xf32>
    %50 = vector.shape_cast %47 : vector<1x7xf32> to vector<1x1x7xf32>
    tpu.vector_store %arg4[%c0_28, %c2_29, %c0_30], %50 {strides = array<i32>} : memref<1x4x7xf32, #tpu.memory_space<vmem>>, vector<1x1x7xf32>,
    %c0_31 = arith.constant 0 : index
    %c3 = arith.constant 3 : index
    %c0_32 = arith.constant 0 : index
    %51 = vector.load %arg4[%c0_31, %c3, %c0_32] : memref<1x4x7xf32, #tpu.memory_space<vmem>>, vector<1x1x7xf32>
    %52 = vector.shape_cast %51 : vector<1x1x7xf32> to vector<1x7xf32>
    %cst_33 = arith.constant dense<0.000000e+00> : vector<7xf32>
    %53 = vector.multi_reduction <add>, %26, %cst_33 [0] : vector<2x7xf32> to vector<7xf32>
    %54 = vector.shape_cast %53 : vector<7xf32> to vector<1x7xf32>
    %55 = arith.addf %52, %54 : vector<1x7xf32>
    %c0_34 = arith.constant 0 : index
    %c3_35 = arith.constant 3 : index
    %c0_36 = arith.constant 0 : index
    %56 = vector.load %arg4[%c0_34, %c3_35, %c0_36] : memref<1x4x7xf32, #tpu.memory_space<vmem>>, vector<1x1x7xf32>
    %57 = vector.shape_cast %56 : vector<1x1x7xf32> to vector<1x7xf32>
    %58 = vector.shape_cast %55 : vector<1x7xf32> to vector<1x1x7xf32>
    tpu.vector_store %arg4[%c0_34, %c3_35, %c0_36], %58 {strides = array<i32>} : memref<1x4x7xf32, #tpu.memory_space<vmem>>, vector<1x1x7xf32>,
    return
  }
  func.func @transform_0(%arg0: i32, %arg1: i32) -> (i32, i32) {
    %c1_i32 = arith.constant 1 : i32
    %0 = arith.muli %arg0, %c1_i32 : i32
    %1 = arith.addi %0, %arg1 : i32
    %c0_i32 = arith.constant 0 : i32
    %2 = arith.minsi %1, %c0_i32 : i32
    %c0_i32_0 = arith.constant 0 : i32
    %c0_i32_1 = arith.constant 0 : i32
    return %2, %c0_i32_0 : i32, i32
  }
  func.func @transform_1(%arg0: i32, %arg1: i32) -> (i32, i32) {
    %c1_i32 = arith.constant 1 : i32
    %0 = arith.muli %arg0, %c1_i32 : i32
    %1 = arith.addi %0, %arg1 : i32
    %c0_i32 = arith.constant 0 : i32
    %2 = arith.minsi %1, %c0_i32 : i32
    %c0_i32_0 = arith.constant 0 : i32
    %c0_i32_1 = arith.constant 0 : i32
    return %2, %c0_i32_0 : i32, i32
  }
  func.func @transform_2(%arg0: i32, %arg1: i32) -> (i32, i32, i32) {
    %c0_i32 = arith.constant 0 : i32
    %c0_i32_0 = arith.constant 0 : i32
    %c0_i32_1 = arith.constant 0 : i32
    return %arg0, %c0_i32, %c0_i32_0 : i32, i32, i32
  }
}

</mosaic_0001>

<bundles_post_ra>
// kernel: kt_loss.1
= control target key start
LH: loop header
LB: loop body
LE: loop exit
PB: predicated region body
PF: predicated region fallthrough
CT: control target
= control target key end

     0   :  { %vm69_vm0 = vcmask 52224   ;;  %vm89_vm1 = vcmask 50176   ;;  %v151_v0 = vmov 0.0   ;;  %vm152_vm6 = vmmov 1   ;;  %s209_s0 = inlined_call_operand.vmem [shape: f32[2,7], index: 0, kind: input, shape index: {}]   ;;  %s210_s1 = inlined_call_operand.vmem [shape: f32[2,7], index: 1, kind: input, shape index: {}]   ;;  %s211_s2 = inlined_call_operand.vmem [shape: f32[1,4,7], index: 2, kind: output, shape index: {}]  }
   0x1   :  { %70 = vst.msk [vmem:[%s211_s2] sm:$0xf] %vm69_vm0, %v151_v0  ;;  %v71_v1 = vld [vmem:[%s209_s0] sm:$0x3]  ;;  %vm98_vm8 = vcmask 49152  }
   0x2   :  { %v72_v2 = vld [vmem:[%s210_s1] sm:$0x3]  ;;  %v77_v3 = vsub.f32 1.0, %v71_v1  ;;  %vm83_vm4 = vcmp.gt.f32.partialorder %v71_v1, 0.5 }
   0x3   :  { %vm73_vm2 = vcmp.ne.f32.partialorder %v72_v2, -1.0  ;;  %vm76_vm3 = vcmp.eq.f32.partialorder %v72_v2, 1.0 }
   0x4   :  { %v146_v4 = vsel %vm73_vm2, 1.0, %v151_v0  ;;  %vm84_vm5 = vmxor %vm83_vm4, %vm76_vm3  ;;  %v78_v5 = vsel %vm76_vm3, %v71_v1, %v77_v3 }
   0x5   :  { %vm85_vm7 = vmxor %vm84_vm5, %vm152_vm6  ;;  %v87_v6 = vsel %vm76_vm3, %v146_v4, 0.0  ;;  %v111_v7 = vsel %vm89_vm1, %v146_v4, 0.0  ;;  %v79_v8 = vsel %vm73_vm2, %v78_v5, 1.0 }
   0x6   :  { %v86_v9 = vsel %vm85_vm7, %v146_v4, 0.0  ;;  %v112_v10 = vrot.slane %v111_v7, 4  ;;  %v121_v11 = vsel %vm89_vm1, %v87_v6, 0.0  ;;  %149 = vlog2.f32 %v79_v8 }
   0x7   :  { %v101_v12 = vsel %vm89_vm1, %v86_v9, 0.0  ;;  %v122_v13 = vrot.slane %v121_v11, 4 }
   0x8   :  { %v102_v14 = vrot.slane %v101_v12, 4  ;;  %v113_v15 = vadd.f32 %v112_v10, %v111_v7  ;;  %v110_v27 = vld [vmem:[%s211_s2 + $0x2] sm:$0x1]  ;;  %v120_v32 = vld [vmem:[%s211_s2 + $0x3] sm:$0x1] }
   0x9   :  { %v123_v16 = vadd.f32 %v122_v13, %v121_v11  ;;  %v100_v33 = vld [vmem:[%s211_s2 + $0x1] sm:$0x1]  ;;  %v88_v45 = vld [vmem:[%s211_s2] sm:$0x1] }
   0xa   :  { %v103_v17 = vadd.f32 %v102_v14, %v101_v12  ;;  %v114_v18 = vrot.slane %v113_v15, 2 }
   0xb   :  { %v124_v19 = vrot.slane %v123_v16, 2 }
   0xc   :  { %v104_v20 = vrot.slane %v103_v17, 2  ;;  %v115_v21 = vadd.f32 %v114_v18, %v113_v15  ;;  %v150_v22 = vpop.eup %149 }
   0xd   :  { %v125_v23 = vadd.f32 %v124_v19, %v123_v16  ;;  %v81_v24 = vmul.f32 0.6931472, %v150_v22 }
   0xe   :  { %v105_v25 = vadd.f32 %v104_v20, %v103_v17  ;;  %v116_v26 = vrot.slane %v115_v21, 1 }
   0xf   :  { %v126_v28 = vrot.slane %v125_v23, 1  ;;  %v82_v29 = vsub.f32 0.0, %v81_v24 }
  0x10   :  { %v106_v30 = vrot.slane %v105_v25, 1  ;;  %v117_v31 = vadd.f32 %v116_v26, %v115_v21 }
  0x11   :  { %v127_v34 = vadd.f32 %v126_v28, %v125_v23  ;;  %v90_v35 = vsel %vm89_vm1, %v82_v29, 0.0 }
  0x12   :  { %v107_v36 = vadd.f32 %v106_v30, %v105_v25  ;;  %v118_v37 = vadd.f32 %v117_v31, %v110_v27  ;;  %v91_v38 = vrot.slane %v90_v35, 4 }
  0x13   :  { %v128_v39 = vadd.f32 %v127_v34, %v120_v32 }
  0x14   :  { %v108_v40 = vadd.f32 %v107_v36, %v100_v33  ;;  %119 = vst.msk [vmem:[%s211_s2 + $0x2] sm:$0x1] %vm98_vm8, %v118_v37  ;;  %v92_v41 = vadd.f32 %v91_v38, %v90_v35 }
  0x15   :  { %129 = vst.msk [vmem:[%s211_s2 + $0x3] sm:$0x1] %vm98_vm8, %v128_v39 }
  0x16   :  { %109 = vst.msk [vmem:[%s211_s2 + $0x1] sm:$0x1] %vm98_vm8, %v108_v40  ;;  %v93_v42 = vrot.slane %v92_v41, 2 }
  0x18   :  { %v94_v43 = vadd.f32 %v93_v42, %v92_v41 }
  0x1a   :  { %v95_v44 = vrot.slane %v94_v43, 1 }
  0x1c   :  { %v96_v46 = vadd.f32 %v95_v44, %v94_v43 }
  0x1e   :  { %v97_v47 = vadd.f32 %v96_v46, %v88_v45 }
  0x20   :  { %99 = vst.msk [vmem:[%s211_s2] sm:$0x1] %vm98_vm8, %v97_v47 }

</bundles_post_ra>
